<compile_context>
chip_gen: v6e
topology: v6e:2x2x1
jax: 0.10.0
libtpu: 0.0.40
codegen_flags: <defaults>
</compile_context>

<pallas_src>
import numpy as np
import jax
import jax.numpy as jnp
from jax import lax
from jax.experimental import pallas as pl
from jax.experimental.pallas import tpu as pltpu


def _round_up(x, m):
    return ((x + m - 1) // m) * m


def _phase_len(total, r, s):
    return 0 if total <= r else (total - 1 - r) // s + 1


# ---------------------------------------------------------------------------
# Pallas kernel: tiled (patches @ packed_weight) + bias  — the hot path
# ---------------------------------------------------------------------------
def _matmul_bias_kernel(p_ref, w_ref, b_ref, o_ref):
    acc = jnp.dot(p_ref[...], w_ref[...], preferred_element_type=jnp.float32)
    o_ref[...] = (acc + b_ref[...]).astype(o_ref.dtype)


def _choose_tm(m):
    # Big M tiles amortize the ~0.35us per-grid-step overhead; multiples of 256
    # keep the 256-wide MXU (v6e/v7x) filled.  Small problems fall back.
    if m >= 1024:
        return 512
    if m >= 512:
        return 256
    if m >= 128:
        return 128
    return max(16, _round_up(m, 16))


def _pallas_matmul_bias(patches, weight, bias):
    """patches: (M, Kd) bf16, weight: (Kd, Ncp) bf16, bias: (Ncp,) f32 -> (M, Ncp) f32.

    Ncp must be a multiple of 128 so output stores are lane-dense."""
    M, Kd = patches.shape
    Kd2, Ncp = weight.shape
    assert Kd == Kd2 and Ncp % 128 == 0
    tm = _choose_tm(M)
    grid_m = pl.cdiv(M, tm)          # ragged last tile is masked by Pallas
    bias2d = bias.reshape(1, Ncp)

    return pl.pallas_call(
        _matmul_bias_kernel,
        out_shape=jax.ShapeDtypeStruct((M, Ncp), jnp.float32),
        grid_spec=pltpu.PrefetchScalarGridSpec(
            num_scalar_prefetch=0,
            grid=(grid_m,),
            in_specs=[
                pl.BlockSpec((tm, Kd), lambda i: (i, 0)),   # patch rows, tiled over M
                pl.BlockSpec((Kd, Ncp), lambda i: (0, 0)),  # packed complex weight (resident)
                pl.BlockSpec((1, Ncp), lambda i: (0, 0)),   # packed bias row (resident)
            ],
            out_specs=pl.BlockSpec((tm, Ncp), lambda i: (i, 0)),
        ),
        compiler_params=pltpu.CompilerParams(
            dimension_semantics=("parallel",),
            vmem_limit_bytes=32 * 1024 * 1024,
        ),
    )(patches, weight, bias2d)


# ---------------------------------------------------------------------------
# Module
# ---------------------------------------------------------------------------
class ComplexConvTranspose2d:
    def __init__(self, in_channel, out_channel, kernel_size, stride=1, padding=0,
                 output_padding=0, dilation=1, groups=1, bias=True, key=None):
        assert groups == 1  # TODO(synk): grouped transposed conv not implemented
        self.ci, self.co, self.k = in_channel, out_channel, kernel_size
        self.s, self.p, self.op, self.d = stride, padding, output_padding, dilation
        key = jax.random.PRNGKey(0) if key is None else key
        k1, k2, k3, k4 = jax.random.split(key, 4)
        # PyTorch ConvTranspose2d weight shape: (in, out/groups, kH, kW)
        wshape = (in_channel, out_channel, kernel_size, kernel_size)
        self.w_re = 0.1 * jax.random.normal(k1, wshape, dtype=jnp.float32)
        self.w_im = 0.1 * jax.random.normal(k2, wshape, dtype=jnp.float32)
        if bias:
            self.b_re = 0.1 * jax.random.normal(k3, (out_channel,), dtype=jnp.float32)
            self.b_im = 0.1 * jax.random.normal(k4, (out_channel,), dtype=jnp.float32)
        else:
            self.b_re = jnp.zeros((out_channel,), jnp.float32)
            self.b_im = jnp.zeros((out_channel,), jnp.float32)

    # --- static (trace-time) sub-pixel bookkeeping ---------------------------
    def _phase_taps(self, r):
        """Kernel taps k contributing to output phase r, and their input offsets.

        out[ho] sums x[i] * w[..., k, ...] with i = (ho + p - k*d)/s; a tap k
        contributes to phase r = ho mod s iff (r + p - k*d) % s == 0, and then
        i = a + (r + p - k*d)//s where ho = r + a*s.
        """
        taps, offs = [], []
        for kk in range(self.k):
            t = r + self.p - kk * self.d
            if t % self.s == 0:
                taps.append(kk)
                offs.append(t // self.s)
        return taps, offs

    def __call__(self, x):
        N, Ci, H, W, _ = x.shape
        assert Ci == self.ci
        K, s, p, op, d, Co = self.k, self.s, self.p, self.op, self.d, self.co
        Ho = (H - 1) * s - 2 * p + d * (K - 1) + op + 1
        Wo = (W - 1) * s - 2 * p + d * (K - 1) + op + 1
        assert Ho > 0 and Wo > 0

        # Phase bookkeeping + required input padding (all Python ints).
        phases = []
        i_lo, i_hi = 0, H - 1
        j_lo, j_hi = 0, W - 1
        for rh in range(s):
            Ho_r = _phase_len(Ho, rh, s)
            kh_taps, kh_offs = self._phase_taps(rh)
            for rc in range(s):
                Wo_c = _phase_len(Wo, rc, s)
                kw_taps, kw_offs = self._phase_taps(rc)
                phases.append((rh, rc, Ho_r, Wo_c, kh_taps, kh_offs, kw_taps, kw_offs))
                if Ho_r and kh_offs:
                    i_lo = min(i_lo, min(kh_offs))
                    i_hi = max(i_hi, max(kh_offs) + Ho_r - 1)
                if Wo_c and kw_offs:
                    j_lo = min(j_lo, min(kw_offs))
                    j_hi = max(j_hi, max(kw_offs) + Wo_c - 1)
        pad_t, pad_b = -i_lo, i_hi - (H - 1)
        pad_l, pad_r = -j_lo, j_hi - (W - 1)

        # Channels-last, [re | im] concatenated, bf16 (halves the streamed bytes),
        # zero-padded once for all phases.  No stride zero-insertion anywhere.
        x_re = jnp.transpose(x[..., 0], (0, 2, 3, 1))          # (N, H, W, Ci)
        x_im = jnp.transpose(x[..., 1], (0, 2, 3, 1))
        xc = jnp.concatenate([x_re, x_im], axis=-1).astype(jnp.bfloat16)
        xc = jnp.pad(xc, ((0, 0), (pad_t, pad_b), (pad_l, pad_r), (0, 0)))

        Nc = 2 * Co
        Ncp = _round_up(Nc, 128)                               # lane-dense output
        b2 = jnp.stack([self.b_re - self.b_im, self.b_re + self.b_im], axis=0)  # (2, Co)
        bias_full = jnp.pad(b2.reshape(Nc), (0, Ncp - Nc)).astype(jnp.float32)

        w_re_b = self.w_re.astype(jnp.bfloat16)
        w_im_b = self.w_im.astype(jnp.bfloat16)

        results = []   # (rh, rc, phase output (N, Ho_r, Wo_c, 2, Co) f32)
        for (rh, rc, Ho_r, Wo_c, kh_taps, kh_offs, kw_taps, kw_offs) in phases:
            if Ho_r == 0 or Wo_c == 0:
                continue
            T = len(kh_taps) * len(kw_taps)
            if T == 0:
                # No kernel tap ever lands on this phase -> output is bias only.
                ph = jnp.broadcast_to(b2, (N, Ho_r, Wo_c, 2, Co)).astype(jnp.float32)
                results.append((rh, rc, ph))
                continue

            # im2col over the original (non-dilated) input: one contiguous
            # (Ho_r, Wo_c) window per contributing tap, plus the matching rows
            # of the packed complex weight (row order: tap-major, [re ci.., im ci..]).
            cols, wrows = [], []
            for kh, oh in zip(kh_taps, kh_offs):
                for kw, ow in zip(kw_taps, kw_offs):
                    r0, c0 = oh + pad_t, ow + pad_l
                    cols.append(lax.slice(xc, (0, r0, c0, 0),
                                          (N, r0 + Ho_r, c0 + Wo_c, 2 * Ci)))
                    wre_t = w_re_b[:, :, kh, kw]               # (Ci, Co)
                    wim_t = w_im_b[:, :, kh, kw]
                    wrows.append(jnp.concatenate(
                        [jnp.concatenate([wre_t, wim_t], axis=-1),    # real-input rows
                         jnp.concatenate([-wim_t, wre_t], axis=-1)],  # imag-input rows
                        axis=0))                                       # (2Ci, 2Co)

            patches = jnp.stack(cols, axis=3)                  # (N,Ho_r,Wo_c,T,2Ci) bf16
            patches = patches.reshape(N * Ho_r * Wo_c, T * 2 * Ci)
            w_full = jnp.concatenate(wrows, axis=0)            # (T*2Ci, 2Co) bf16
            w_full = jnp.pad(w_full, ((0, 0), (0, Ncp - Nc)))  # zero lanes -> sliced later

            ph = _pallas_matmul_bias(patches, w_full, bias_full)   # (M_r, Ncp) f32
            ph = ph[:, :Nc].reshape(N, Ho_r, Wo_c, 2, Co)
            results.append((rh, rc, ph))

        # Interleave the phases back into the full output.
        if Ho % s == 0 and Wo % s == 0 and len(results) == s * s:
            # Single pixel-shuffle pass (phases were appended rh-major, rc-minor).
            st = jnp.stack([ph for _, _, ph in results], axis=0)
            st = st.reshape(s, s, N, Ho // s, Wo // s, 2, Co)
            out = jnp.transpose(st, (2, 3, 0, 4, 1, 5, 6)).reshape(N, Ho, Wo, 2, Co)
        else:
            out = jnp.zeros((N, Ho, Wo, 2, Co), jnp.float32)
            for rh, rc, ph in results:
                out = out.at[:, rh::s, rc::s].set(ph)

        # TODO(synk): keep (N, Ho, Wo, 2, Co) if the consumer accepts channels-last;
        # this transpose only exists to match torch's NCHW + trailing [re, im].
        return jnp.transpose(out, (0, 4, 1, 2, 3))             # (N, Co, Ho, Wo, 2)


# ---------------------------------------------------------------------------
# Reference (XLA conv_general_dilated, PyTorch ConvTranspose2d semantics)
# ---------------------------------------------------------------------------
def _convT_ref(x, w, b, s, p, op, d):
    K = w.shape[-1]
    w2 = jnp.transpose(w[:, :, ::-1, ::-1], (1, 0, 2, 3))  # (Co, Ci, K, K)
    lo = d * (K - 1) - p
    hi = lo + op
    y = lax.conv_general_dilated(
        x, w2, window_strides=(1, 1), padding=[(lo, hi), (lo, hi)],
        lhs_dilation=(s, s), rhs_dilation=(d, d),
        dimension_numbers=('NCHW', 'OIHW', 'NCHW'),
        precision=lax.Precision.HIGHEST)
    return y + b[None, :, None, None]


if __name__ == "__main__":
    key = jax.random.PRNGKey(0)
    N, Ci, Co, H, W, K = 2, 4, 4, 16, 16, 3
    stride, padding, output_padding, dilation = 2, 1, 1, 1

    mod = ComplexConvTranspose2d(Ci, Co, K, stride, padding, output_padding,
                                 dilation, key=key)
    x = jax.random.normal(jax.random.fold_in(key, 123),
                          (N, Ci, H, W, 2), dtype=jnp.float32)

    fwd = jax.jit(mod.__call__)
    y = jax.block_until_ready(fwd(x))

    # Independent check against XLA's dilated conv (PyTorch conv_transpose2d
    # semantics).  The kernel streams bf16 operands with f32 accumulation, so
    # the reference is evaluated on the same bf16-rounded operands to keep a
    # tight tolerance on the algorithm itself.
    rd = lambda a: a.astype(jnp.bfloat16).astype(jnp.float32)
    xr, xi = rd(x[..., 0]), rd(x[..., 1])
    wr, wi = rd(mod.w_re), rd(mod.w_im)
    real = (_convT_ref(xr, wr, mod.b_re, stride, padding, output_padding, dilation)
            - _convT_ref(xi, wi, mod.b_im, stride, padding, output_padding, dilation))
    imag = (_convT_ref(xi, wr, mod.b_re, stride, padding, output_padding, dilation)
            + _convT_ref(xr, wi, mod.b_im, stride, padding, output_padding, dilation))
    y_ref = jnp.stack([real, imag], axis=-1)

    assert y.shape == y_ref.shape, (y.shape, y_ref.shape)
    np.testing.assert_allclose(np.asarray(y), np.asarray(y_ref), atol=2e-3, rtol=2e-3)
    print("KERNEL_OK")
</pallas_src>

<mosaic_0001>
module attributes {stable_mosaic.version = 11 : i64} {
  func.func @_matmul_bias_kernel(%arg0: i32, %arg1: memref<256x8xbf16, #tpu.memory_space<vmem>>, %arg2: memref<8x128xbf16, #tpu.memory_space<vmem>>, %arg3: memref<1x128xf32, #tpu.memory_space<vmem>>, %arg4: memref<256x128xf32, #tpu.memory_space<vmem>>) attributes {dimension_semantics = [#tpu.dimension_semantics<parallel>], iteration_bounds = array<i64: 2>, scalar_prefetch = 0 : i64, scratch_operands = 0 : i64, tpu.core_type = #tpu.core_type<tc>, window_params = [{transform_indices = @transform_0, window_bounds = array<i64: 256, 8>}, {pipeline_mode = #tpu.pipeline_mode<synchronous>, transform_indices = @transform_1, window_bounds = array<i64: 8, 128>}, {pipeline_mode = #tpu.pipeline_mode<synchronous>, transform_indices = @transform_2, window_bounds = array<i64: 1, 128>}, {transform_indices = @transform_3, window_bounds = array<i64: 256, 128>}]} {
    %c0 = arith.constant 0 : index
    %c0_0 = arith.constant 0 : index
    %0 = vector.load %arg1[%c0, %c0_0] : memref<256x8xbf16, #tpu.memory_space<vmem>>, vector<256x8xbf16>
    %c0_1 = arith.constant 0 : index
    %c0_2 = arith.constant 0 : index
    %1 = vector.load %arg2[%c0_1, %c0_2] : memref<8x128xbf16, #tpu.memory_space<vmem>>, vector<8x128xbf16>
    %cst = arith.constant dense<0.000000e+00> : vector<256x128xf32>
    %2 = tpu.matmul %0, %1, %cst {dimension_numbers = #tpu.dot_dimension_numbers<[1], [0], [0], [1], [0, 0, 1, 1], [], []>} : vector<256x8xbf16>, vector<8x128xbf16>, vector<256x128xf32> -> vector<256x128xf32>
    %c0_3 = arith.constant 0 : index
    %c0_4 = arith.constant 0 : index
    %3 = vector.load %arg3[%c0_3, %c0_4] : memref<1x128xf32, #tpu.memory_space<vmem>>, vector<1x128xf32>
    %4 = vector.broadcast %3 : vector<1x128xf32> to vector<256x128xf32>
    %5 = arith.addf %2, %4 : vector<256x128xf32>
    %c0_5 = arith.constant 0 : index
    %c0_6 = arith.constant 0 : index
    %6 = vector.load %arg4[%c0_5, %c0_6] : memref<256x128xf32, #tpu.memory_space<vmem>>, vector<256x128xf32>
    tpu.vector_store %arg4[%c0_5, %c0_6], %5 {strides = array<i32>} : memref<256x128xf32, #tpu.memory_space<vmem>>, vector<256x128xf32>,
    return
  }
  func.func @transform_0(%arg0: i32) -> (i32, i32) {
    %c0_i32 = arith.constant 0 : i32
    %c0_i32_0 = arith.constant 0 : i32
    return %arg0, %c0_i32 : i32, i32
  }
  func.func @transform_1(%arg0: i32) -> (i32, i32) {
    %c0_i32 = arith.constant 0 : i32
    %c0_i32_0 = arith.constant 0 : i32
    %c0_i32_1 = arith.constant 0 : i32
    return %c0_i32, %c0_i32_0 : i32, i32
  }
  func.func @transform_2(%arg0: i32) -> (i32, i32) {
    %c0_i32 = arith.constant 0 : i32
    %c0_i32_0 = arith.constant 0 : i32
    %c0_i32_1 = arith.constant 0 : i32
    return %c0_i32, %c0_i32_0 : i32, i32
  }
  func.func @transform_3(%arg0: i32) -> (i32, i32) {
    %c0_i32 = arith.constant 0 : i32
    %c0_i32_0 = arith.constant 0 : i32
    return %arg0, %c0_i32 : i32, i32
  }
}

module attributes {stable_mosaic.version = 11 : i64} {
  func.func @_matmul_bias_kernel(%arg0: i32, %arg1: memref<256x16xbf16, #tpu.memory_space<vmem>>, %arg2: memref<16x128xbf16, #tpu.memory_space<vmem>>, %arg3: memref<1x128xf32, #tpu.memory_space<vmem>>, %arg4: memref<256x128xf32, #tpu.memory_space<vmem>>) attributes {dimension_semantics = [#tpu.dimension_semantics<parallel>], iteration_bounds = array<i64: 2>, scalar_prefetch = 0 : i64, scratch_operands = 0 : i64, tpu.core_type = #tpu.core_type<tc>, window_params = [{transform_indices = @transform_0, window_bounds = array<i64: 256, 16>}, {pipeline_mode = #tpu.pipeline_mode<synchronous>, transform_indices = @transform_1, window_bounds = array<i64: 16, 128>}, {pipeline_mode = #tpu.pipeline_mode<synchronous>, transform_indices = @transform_2, window_bounds = array<i64: 1, 128>}, {transform_indices = @transform_3, window_bounds = array<i64: 256, 128>}]} {
    %c0 = arith.constant 0 : index
    %c0_0 = arith.constant 0 : index
    %0 = vector.load %arg1[%c0, %c0_0] : memref<256x16xbf16, #tpu.memory_space<vmem>>, vector<256x16xbf16>
    %c0_1 = arith.constant 0 : index
    %c0_2 = arith.constant 0 : index
    %1 = vector.load %arg2[%c0_1, %c0_2] : memref<16x128xbf16, #tpu.memory_space<vmem>>, vector<16x128xbf16>
    %cst = arith.constant dense<0.000000e+00> : vector<256x128xf32>
    %2 = tpu.matmul %0, %1, %cst {dimension_numbers = #tpu.dot_dimension_numbers<[1], [0], [0], [1], [0, 0, 1, 1], [], []>} : vector<256x16xbf16>, vector<16x128xbf16>, vector<256x128xf32> -> vector<256x128xf32>
    %c0_3 = arith.constant 0 : index
    %c0_4 = arith.constant 0 : index
    %3 = vector.load %arg3[%c0_3, %c0_4] : memref<1x128xf32, #tpu.memory_space<vmem>>, vector<1x128xf32>
    %4 = vector.broadcast %3 : vector<1x128xf32> to vector<256x128xf32>
    %5 = arith.addf %2, %4 : vector<256x128xf32>
    %c0_5 = arith.constant 0 : index
    %c0_6 = arith.constant 0 : index
    %6 = vector.load %arg4[%c0_5, %c0_6] : memref<256x128xf32, #tpu.memory_space<vmem>>, vector<256x128xf32>
    tpu.vector_store %arg4[%c0_5, %c0_6], %5 {strides = array<i32>} : memref<256x128xf32, #tpu.memory_space<vmem>>, vector<256x128xf32>,
    return
  }
  func.func @transform_0(%arg0: i32) -> (i32, i32) {
    %c0_i32 = arith.constant 0 : i32
    %c0_i32_0 = arith.constant 0 : i32
    return %arg0, %c0_i32 : i32, i32
  }
  func.func @transform_1(%arg0: i32) -> (i32, i32) {
    %c0_i32 = arith.constant 0 : i32
    %c0_i32_0 = arith.constant 0 : i32
    %c0_i32_1 = arith.constant 0 : i32
    return %c0_i32, %c0_i32_0 : i32, i32
  }
  func.func @transform_2(%arg0: i32) -> (i32, i32) {
    %c0_i32 = arith.constant 0 : i32
    %c0_i32_0 = arith.constant 0 : i32
    %c0_i32_1 = arith.constant 0 : i32
    return %c0_i32, %c0_i32_0 : i32, i32
  }
  func.func @transform_3(%arg0: i32) -> (i32, i32) {
    %c0_i32 = arith.constant 0 : i32
    %c0_i32_0 = arith.constant 0 : i32
    return %arg0, %c0_i32 : i32, i32
  }
}

module attributes {stable_mosaic.version = 11 : i64} {
  func.func @_matmul_bias_kernel(%arg0: i32, %arg1: memref<256x32xbf16, #tpu.memory_space<vmem>>, %arg2: memref<32x128xbf16, #tpu.memory_space<vmem>>, %arg3: memref<1x128xf32, #tpu.memory_space<vmem>>, %arg4: memref<256x128xf32, #tpu.memory_space<vmem>>) attributes {dimension_semantics = [#tpu.dimension_semantics<parallel>], iteration_bounds = array<i64: 2>, scalar_prefetch = 0 : i64, scratch_operands = 0 : i64, tpu.core_type = #tpu.core_type<tc>, window_params = [{transform_indices = @transform_0, window_bounds = array<i64: 256, 32>}, {pipeline_mode = #tpu.pipeline_mode<synchronous>, transform_indices = @transform_1, window_bounds = array<i64: 32, 128>}, {pipeline_mode = #tpu.pipeline_mode<synchronous>, transform_indices = @transform_2, window_bounds = array<i64: 1, 128>}, {transform_indices = @transform_3, window_bounds = array<i64: 256, 128>}]} {
    %c0 = arith.constant 0 : index
    %c0_0 = arith.constant 0 : index
    %0 = vector.load %arg1[%c0, %c0_0] : memref<256x32xbf16, #tpu.memory_space<vmem>>, vector<256x32xbf16>
    %c0_1 = arith.constant 0 : index
    %c0_2 = arith.constant 0 : index
    %1 = vector.load %arg2[%c0_1, %c0_2] : memref<32x128xbf16, #tpu.memory_space<vmem>>, vector<32x128xbf16>
    %cst = arith.constant dense<0.000000e+00> : vector<256x128xf32>
    %2 = tpu.matmul %0, %1, %cst {dimension_numbers = #tpu.dot_dimension_numbers<[1], [0], [0], [1], [0, 0, 1, 1], [], []>} : vector<256x32xbf16>, vector<32x128xbf16>, vector<256x128xf32> -> vector<256x128xf32>
    %c0_3 = arith.constant 0 : index
    %c0_4 = arith.constant 0 : index
    %3 = vector.load %arg3[%c0_3, %c0_4] : memref<1x128xf32, #tpu.memory_space<vmem>>, vector<1x128xf32>
    %4 = vector.broadcast %3 : vector<1x128xf32> to vector<256x128xf32>
    %5 = arith.addf %2, %4 : vector<256x128xf32>
    %c0_5 = arith.constant 0 : index
    %c0_6 = arith.constant 0 : index
    %6 = vector.load %arg4[%c0_5, %c0_6] : memref<256x128xf32, #tpu.memory_space<vmem>>, vector<256x128xf32>
    tpu.vector_store %arg4[%c0_5, %c0_6], %5 {strides = array<i32>} : memref<256x128xf32, #tpu.memory_space<vmem>>, vector<256x128xf32>,
    return
  }
  func.func @transform_0(%arg0: i32) -> (i32, i32) {
    %c0_i32 = arith.constant 0 : i32
    %c0_i32_0 = arith.constant 0 : i32
    return %arg0, %c0_i32 : i32, i32
  }
  func.func @transform_1(%arg0: i32) -> (i32, i32) {
    %c0_i32 = arith.constant 0 : i32
    %c0_i32_0 = arith.constant 0 : i32
    %c0_i32_1 = arith.constant 0 : i32
    return %c0_i32, %c0_i32_0 : i32, i32
  }
  func.func @transform_2(%arg0: i32) -> (i32, i32) {
    %c0_i32 = arith.constant 0 : i32
    %c0_i32_0 = arith.constant 0 : i32
    %c0_i32_1 = arith.constant 0 : i32
    return %c0_i32, %c0_i32_0 : i32, i32
  }
  func.func @transform_3(%arg0: i32) -> (i32, i32) {
    %c0_i32 = arith.constant 0 : i32
    %c0_i32_0 = arith.constant 0 : i32
    return %arg0, %c0_i32 : i32, i32
  }
}

</mosaic_0001>

<bundles_post_ra>
// kernel: a_call__.4
= control target key start
LH: loop header
LB: loop body
LE: loop exit
PB: predicated region body
PF: predicated region fallthrough
CT: control target
= control target key end

     0   :  { %8 = vsyncpa [#allocation3], 0  ;;  %s1054_s0 = inlined_call_operand.vmem [shape: bf16[512,8], index: 0, kind: input, shape index: {}]   ;;  %s1055_s1 = inlined_call_operand.hbm [shape: bf16[8,128], index: 1, kind: input, shape index: {}]   ;;  %s1056_s2 = inlined_call_operand.hbm [shape: f32[1,128], index: 2, kind: input, shape index: {}]   ;;  %s1057_s3 = inlined_call_operand.vmem [shape: f32[512,128], index: 3, kind: output, shape index: {}]  }
   0x1   :  { %9 = vsyncpa [#allocation5], 0  ;;  %s883_s12 = smov 0  }
   0x2 LB: > { %s645_s13 = sadd.s32 4294967295, %s859_s12   ;;  %p647_p0 = scmp.ge.s32.totalorder %s859_s12, 1  ;;  %s859_s12 = sphi %s883_s12, %s15_s12  }
   0x3   : > { %p114_p1 = scmp.lt.s32.totalorder %s859_s12, 3  ;;  %p893_p2 = scmp.eq.s32.totalorder %s645_s13, 0 }
   0x4   : > { %s861_s16 = smov [#allocation2]   ;;  %s862_s18 = smov [#allocation4]  }
   0x5   : > { %s1060_s14 = scalar_select %p893_p2, 1, 0 }
   0x6   : > { %p897_p3 = pnand %p647_p0, %p114_p1  ;;  %s127_s17 = sshll.u32 %s861_s16, 4  ;;  %s128_s17 = int_to_ptr.vmem [resolvable:$true] %s127_s17 }
   0x7   : > { %s138_s19 = sshll.u32 %s862_s18, 4  ;;  %s804_s21 = scalar_lea.vmem %s128_s17, 64  ;;  %s139_s19 = int_to_ptr.vmem [resolvable:$true] %s138_s19 }
   0x8   : > { %p756_p4 = pneg %p897_p3  ;;  %p805_p7 = scmp.ne.s32.totalorder %s128_s17, %s804_s21 }
   0x9   : > { %p812_p10 = scmp.lt.s32.totalorder %s128_s17, %s128_s17  ;;  %p813_p11 = scmp.lt.s32.totalorder %s804_s21, %s804_s21 }
   0xa   : > { %p905_p5 = pnand %p893_p2, %p756_p4 }
   0xb   : > { %p814_p12 = por %p813_p11, %p812_p10 }
   0xc   : > { %p795_p6 = pneg %p905_p5 }
   0xe   : > { %p807_p8 = pnand %p805_p7, %p795_p6 }
  0x10   : > { %p808_p9 = pneg %p807_p8 }
  0x12   : > { %p815_p13 = pnand %p814_p12, %p808_p9 }
  0x14   : > { %818 = shalt.err (!%p815_p13)
}
  0x15   : > { %759 = dma.hbm_to_vmem [thread:$0]  (!%p905_p5), %s1055_s1, 64, %s128_s17, [#allocation3]  }
  0x16   : > { %s830_s24 = scalar_lea.vmem %s139_s19, 16  ;;  %s837_s25 = scalar_lea.vmem %s139_s19, 32 }
  0x17   : > { %p831_p0 = scmp.ne.s32.totalorder %s139_s19, %s830_s24  ;;  %p838_p7 = scmp.lt.s32.totalorder %s139_s19, %s139_s19 }
  0x18   : > { %p839_p8 = scmp.lt.s32.totalorder %s837_s25, %s830_s24 }
  0x19   : > { %p833_p1 = pnand %p831_p0, %p795_p6 }
  0x1a   : > { %p840_p2 = por %p839_p8, %p838_p7 }
  0x1b   : > { %p834_p4 = pneg %p833_p1 }
  0x1d   : > { %p841_p10 = pnand %p840_p2, %p834_p4 }
  0x1f   : > { %844 = shalt.err (!%p841_p10)
}
  0x20   : > { %762 = dma.hbm_to_vmem [thread:$0]  (!%p905_p5), %s1056_s2, 16, %s139_s19, [#allocation5]  }
  0x21   : > { %160 = sbr.rel (%p897_p3) target bundleno = 276 (0x114), region = 32  ;;  %p1063_p9 = scmp.ne.s32.totalorder (!%p897_p3), %s1060_s14, 0 }
  0x26   : > { %850 = dma.done.wait (%p1063_p9), [#allocation3], 64  }
  0x27   : > { %852 = vsyncadd (%p1063_p9), [#allocation3], 4294967232 }
  0x28   : > { %854 = dma.done.wait (%p1063_p9), [#allocation5], 16  }
  0x29   : > { %856 = vsyncadd (%p1063_p9), [#allocation5], 4294967280  ;;  %s654_s28 = sshll.u32 %s645_s13, 5  ;;  %vm370_vm0 = vcmask 1043456   ;;  %vm321_vm1 = vcmask 64512  }
  0x2a   : > { %p189_p2 = scmp.lt.s32.totalorder %s654_s28, 63  ;;  %v233_v0 = vld [vmem:[#allocation2] sm:$0xf]  ;;  %v980_v18 = vld [vmem:[#allocation4] ss:$0 sm:$0xff] }
  0x2b   : > { %746 = vmatprep.subr.msk.bf16.mxu0 %vm370_vm0, %v233_v0  ;;  %747 = vmatprep.subr.msk.bf16.mxu1 %vm370_vm0, %v233_v0  ;;  %v372_v1 = vsel %vm370_vm0, %v233_v0, 0 }
  0x2c   : > { %s1065_s28 = smov (!%p189_p2, %s654_s28), 63  ;;  %711 = vmatpush3.bf16.msra.mxu0 %v372_v1  ;;  %745 = vmatpush3.bf16.msra.mxu1 %v372_v1 }
  0x2d   : > { %s655_s29 = sshll.u32 %s1065_s28, 2  ;;  %s657_s6 = sshll.u32 %s1065_s28, 3 }
  0x2e   : > { %s945_s5 = scalar_lea.vmem %s1054_s0, %s655_s29  ;;  %s985_s9 = scalar_lea.vmem %s1057_s3, %s657_s6 }
  0x2f   : > { %v777_v2 = vld [vmem:[%s945_s5] sm:$0xff]   ;;  %v779_v4 = vld [vmem:[%s945_s5 + $0x8] sm:$0xff]   ;;  %v781_v6 = vld [vmem:[%s945_s5 + $0x10] sm:$0xff]  }
  0x30   : > { %v778_v3 = vld [vmem:[%s945_s5 + $0x40] sm:$0xff]   ;;  %712 = vmatprep.mubr.msk.bf16.mxu0 %vm321_vm1, %v777_v2  ;;  %v780_v5 = vld [vmem:[%s945_s5 + $0x48] sm:$0xff]   ;;  %v782_v7 = vld [vmem:[%s945_s5 + $0x50] sm:$0xff]  }
  0x31   : > { %728 = vmatprep.mubr.msk.bf16.mxu1 %vm321_vm1, %v778_v3  ;;  %713 = vmatmul.mubr.msk.bf16.vlgmr.msra.gmra.mxu0 %vm321_vm1, %v779_v4  ;;  %v783_v8 = vld [vmem:[%s945_s5 + $0x18] sm:$0xff]   ;;  %v785_v10 = vld [vmem:[%s945_s5 + $0x20] sm:$0xff]   ;;  %v787_v12 = vld [vmem:[%s945_s5 + $0x28] sm:$0xff]  }
  0x32   : > { %729 = vmatmul.mubr.msk.bf16.vlgmr.msra.gmra.mxu1 %vm321_vm1, %v780_v5  ;;  %716 = vmatprep.mubr.msk.bf16.mxu0 %vm321_vm1, %v781_v6  ;;  %v784_v9 = vld [vmem:[%s945_s5 + $0x58] sm:$0xff]   ;;  %v786_v11 = vld [vmem:[%s945_s5 + $0x60] sm:$0xff]   ;;  %v788_v13 = vld [vmem:[%s945_s5 + $0x68] sm:$0xff]  }
  0x33   : > { %732 = vmatprep.mubr.msk.bf16.mxu1 %vm321_vm1, %v782_v7  ;;  %v789_v14 = vld [vmem:[%s945_s5 + $0x30] sm:$0xff]   ;;  %v791_v16 = vld [vmem:[%s945_s5 + $0x38] sm:$0xff]  }
  0x34   : > { %v790_v15 = vld [vmem:[%s945_s5 + $0x70] sm:$0xff]   ;;  %v792_v17 = vld [vmem:[%s945_s5 + $0x78] sm:$0xff]  }
  0x39   : > { %717 = vmatmul.mubr.msk.bf16.gmra.mxu0 %vm321_vm1, %v783_v8 }
  0x3a   : > { %733 = vmatmul.mubr.msk.bf16.gmra.mxu1 %vm321_vm1, %v784_v9  ;;  %720 = vmatprep.mubr.msk.bf16.mxu0 %vm321_vm1, %v785_v10 }
  0x3b   : > { %736 = vmatprep.mubr.msk.bf16.mxu1 %vm321_vm1, %v786_v11 }
  0x41   : > { %721 = vmatmul.mubr.msk.bf16.gmra.mxu0 %vm321_vm1, %v787_v12 }
  0x42   : > { %737 = vmatmul.mubr.msk.bf16.gmra.mxu1 %vm321_vm1, %v788_v13  ;;  %724 = vmatprep.mubr.msk.bf16.mxu0 %vm321_vm1, %v789_v14 }
  0x43   : > { %740 = vmatprep.mubr.msk.bf16.mxu1 %vm321_vm1, %v790_v15 }
  0x49   : > { %725 = vmatmul.mubr.msk.bf16.gmra.mxu0 %vm321_vm1, %v791_v16 }
  0x4a   : > { %741 = vmatmul.mubr.msk.bf16.gmra.mxu1 %vm321_vm1, %v792_v17 }
  0xf1   : > { %v714_v19 = vpop.f32.mrf.mxu0 }
  0xf2   : > { %v417_v20 = vadd.f32 %v714_v19, %v980_v18  ;;  %v730_v21 = vpop.f32.mrf.mxu1 }
  0xf3   : > { %v481_v22 = vadd.f32 %v730_v21, %v980_v18  ;;  %v408_v23 = vpop.f32.mrf.mxu0 }
  0xf4   : > { %537 = vst [vmem:[%s985_s9 + $0x10] sm:$0xff] %v417_v20  ;;  %v409_v24 = vadd.f32 %v980_v18, %v408_v23  ;;  %v472_v25 = vpop.f32.mrf.mxu1 }
  0xf5   : > { %553 = vst [vmem:[%s985_s9 + $0x90] sm:$0xff] %v481_v22  ;;  %v473_v26 = vadd.f32 %v980_v18, %v472_v25  ;;  %v715_v27 = vpop.f32.mrf.mxu0 }
  0xf6   : > { %535 = vst [vmem:[%s985_s9] sm:$0xff] %v409_v24  ;;  %v420_v28 = vadd.f32 %v715_v27, %v980_v18  ;;  %v731_v29 = vpop.f32.mrf.mxu1 }
  0xf7   : > { %551 = vst [vmem:[%s985_s9 + $0x80] sm:$0xff] %v473_v26  ;;  %v484_v30 = vadd.f32 %v731_v29, %v980_v18  ;;  %v411_v31 = vpop.f32.mrf.mxu0 }
  0xf8   : > { %538 = vst [vmem:[%s985_s9 + $0x18] sm:$0xff] %v420_v28  ;;  %v412_v32 = vadd.f32 %v980_v18, %v411_v31  ;;  %v475_v33 = vpop.f32.mrf.mxu1 }
  0xf9   : > { %554 = vst [vmem:[%s985_s9 + $0x98] sm:$0xff] %v484_v30  ;;  %v476_v34 = vadd.f32 %v980_v18, %v475_v33  ;;  %v718_v35 = vpop.f32.mrf.mxu0 }
  0xfa   : > { %536 = vst [vmem:[%s985_s9 + $0x8] sm:$0xff] %v412_v32  ;;  %v433_v36 = vadd.f32 %v718_v35, %v980_v18  ;;  %v734_v37 = vpop.f32.mrf.mxu1 }
  0xfb   : > { %552 = vst [vmem:[%s985_s9 + $0x88] sm:$0xff] %v476_v34  ;;  %v497_v38 = vadd.f32 %v734_v37, %v980_v18  ;;  %v424_v39 = vpop.f32.mrf.mxu0 }
  0xfc   : > { %541 = vst [vmem:[%s985_s9 + $0x30] sm:$0xff] %v433_v36  ;;  %v425_v40 = vadd.f32 %v980_v18, %v424_v39  ;;  %v488_v41 = vpop.f32.mrf.mxu1 }
  0xfd   : > { %557 = vst [vmem:[%s985_s9 + $0xb0] sm:$0xff] %v497_v38  ;;  %v489_v42 = vadd.f32 %v980_v18, %v488_v41  ;;  %v719_v43 = vpop.f32.mrf.mxu0 }
  0xfe   : > { %539 = vst [vmem:[%s985_s9 + $0x20] sm:$0xff] %v425_v40  ;;  %v436_v44 = vadd.f32 %v719_v43, %v980_v18  ;;  %v735_v45 = vpop.f32.mrf.mxu1 }
  0xff   : > { %555 = vst [vmem:[%s985_s9 + $0xa0] sm:$0xff] %v489_v42  ;;  %v500_v46 = vadd.f32 %v735_v45, %v980_v18  ;;  %v427_v47 = vpop.f32.mrf.mxu0 }
 0x100   : > { %542 = vst [vmem:[%s985_s9 + $0x38] sm:$0xff] %v436_v44  ;;  %v428_v48 = vadd.f32 %v980_v18, %v427_v47  ;;  %v491_v49 = vpop.f32.mrf.mxu1 }
 0x101   : > { %558 = vst [vmem:[%s985_s9 + $0xb8] sm:$0xff] %v500_v46  ;;  %v492_v50 = vadd.f32 %v980_v18, %v491_v49  ;;  %v722_v51 = vpop.f32.mrf.mxu0 }
 0x102   : > { %540 = vst [vmem:[%s985_s9 + $0x28] sm:$0xff] %v428_v48  ;;  %v449_v52 = vadd.f32 %v722_v51, %v980_v18  ;;  %v738_v53 = vpop.f32.mrf.mxu1 }
 0x103   : > { %556 = vst [vmem:[%s985_s9 + $0xa8] sm:$0xff] %v492_v50  ;;  %v513_v54 = vadd.f32 %v738_v53, %v980_v18  ;;  %v440_v55 = vpop.f32.mrf.mxu0 }
 0x104   : > { %545 = vst [vmem:[%s985_s9 + $0x50] sm:$0xff] %v449_v52  ;;  %v441_v56 = vadd.f32 %v980_v18, %v440_v55  ;;  %v504_v57 = vpop.f32.mrf.mxu1 }
 0x105   : > { %561 = vst [vmem:[%s985_s9 + $0xd0] sm:$0xff] %v513_v54  ;;  %v505_v58 = vadd.f32 %v980_v18, %v504_v57  ;;  %v723_v59 = vpop.f32.mrf.mxu0 }
 0x106   : > { %543 = vst [vmem:[%s985_s9 + $0x40] sm:$0xff] %v441_v56  ;;  %v452_v60 = vadd.f32 %v723_v59, %v980_v18  ;;  %v739_v61 = vpop.f32.mrf.mxu1 }
 0x107   : > { %559 = vst [vmem:[%s985_s9 + $0xc0] sm:$0xff] %v505_v58  ;;  %v516_v62 = vadd.f32 %v739_v61, %v980_v18  ;;  %v443_v63 = vpop.f32.mrf.mxu0 }
 0x108   : > { %546 = vst [vmem:[%s985_s9 + $0x58] sm:$0xff] %v452_v60  ;;  %v444_v0 = vadd.f32 %v980_v18, %v443_v63  ;;  %v507_v1 = vpop.f32.mrf.mxu1 }
 0x109   : > { %562 = vst [vmem:[%s985_s9 + $0xd8] sm:$0xff] %v516_v62  ;;  %v508_v2 = vadd.f32 %v980_v18, %v507_v1  ;;  %v726_v3 = vpop.f32.mrf.mxu0 }
 0x10a   : > { %544 = vst [vmem:[%s985_s9 + $0x48] sm:$0xff] %v444_v0  ;;  %v465_v4 = vadd.f32 %v726_v3, %v980_v18  ;;  %v742_v5 = vpop.f32.mrf.mxu1 }
 0x10b   : > { %560 = vst [vmem:[%s985_s9 + $0xc8] sm:$0xff] %v508_v2  ;;  %v529_v6 = vadd.f32 %v742_v5, %v980_v18  ;;  %v456_v7 = vpop.f32.mrf.mxu0 }
 0x10c   : > { %549 = vst [vmem:[%s985_s9 + $0x70] sm:$0xff] %v465_v4  ;;  %v457_v8 = vadd.f32 %v980_v18, %v456_v7  ;;  %v520_v9 = vpop.f32.mrf.mxu1 }
 0x10d   : > { %565 = vst [vmem:[%s985_s9 + $0xf0] sm:$0xff] %v529_v6  ;;  %v521_v10 = vadd.f32 %v980_v18, %v520_v9  ;;  %v727_v11 = vpop.f32.mrf.mxu0 }
 0x10e   : > { %547 = vst [vmem:[%s985_s9 + $0x60] sm:$0xff] %v457_v8  ;;  %v468_v12 = vadd.f32 %v727_v11, %v980_v18  ;;  %v743_v13 = vpop.f32.mrf.mxu1 }
 0x10f   : > { %563 = vst [vmem:[%s985_s9 + $0xe0] sm:$0xff] %v521_v10  ;;  %v532_v14 = vadd.f32 %v743_v13, %v980_v18  ;;  %v459_v15 = vpop.f32.mrf.mxu0 }
 0x110   : > { %550 = vst [vmem:[%s985_s9 + $0x78] sm:$0xff] %v468_v12  ;;  %v460_v16 = vadd.f32 %v980_v18, %v459_v15  ;;  %v523_v17 = vpop.f32.mrf.mxu1 }
 0x111   : > { %566 = vst [vmem:[%s985_s9 + $0xf8] sm:$0xff] %v532_v14  ;;  %v524_v19 = vadd.f32 %v980_v18, %v523_v17 }
 0x112   : > { %548 = vst [vmem:[%s985_s9 + $0x68] sm:$0xff] %v460_v16 }
 0x113   : > { %564 = vst [vmem:[%s985_s9 + $0xe8] sm:$0xff] %v524_v19 }
 0x114 PF: > { %s15_s12 = sadd.s32 1, %s859_s12  }
 0x115   : > { %p12_p3 = scmp.ge.s32.totalorder %s15_s12, 4  }
 0x117   :  { %14 = sbr.rel (!%p12_p3) target bundleno = 2 (0x2), region = 71 }
 0x11c   :  { %589 = vsyncpa [#allocation3], 1 }
 0x11d   :  { %591 = vsyncpa [#allocation3 + $0x1], 1 }
 0x11e   :  { %592 = vsyncpa [#allocation5], 1 }

// kernel: a_call__.5
= control target key start
LH: loop header
LB: loop body
LE: loop exit
PB: predicated region body
PF: predicated region fallthrough
CT: control target
= control target key end

     0   :  { %s751_s12 = smov 0   ;;  %s880_s0 = inlined_call_operand.vmem [shape: bf16[512,16], index: 0, kind: input, shape index: {}]   ;;  %s881_s1 = inlined_call_operand.vmem [shape: bf16[16,128], index: 1, kind: input, shape index: {}]   ;;  %s882_s2 = inlined_call_operand.vmem [shape: f32[1,128], index: 2, kind: input, shape index: {}]   ;;  %s883_s3 = inlined_call_operand.vmem [shape: f32[512,128], index: 3, kind: output, shape index: {}]  }
   0x1 LB: > { %s600_s13 = sadd.s32 4294967295, %s729_s12   ;;  %p604_p0 = scmp.ge.s32.totalorder %s729_s12, 1  ;;  %s729_s12 = sphi %s751_s12, %s13_s12  }
   0x2   : > { %p138_p1 = scmp.lt.s32.totalorder %s729_s12, 3 }
   0x4   : > { %p139_p2 = pnand %p604_p0, %p138_p1 }
   0x5   : > { %s605_s16 = sshll.u32 (!%p139_p2), %s600_s13, 5 }
   0x6   : > { %142 = sbr.rel (%p139_p2) target bundleno = 243 (0xf3), region = 32  ;;  %p163_p3 = scmp.lt.s32.totalorder (!%p139_p2), %s605_s16, 63 }
   0xb   : > { %v706_v0 = vld [vmem:[%s881_s1] sm:$0xff]   ;;  %s885_s16 = smov (!%p163_p3, %s605_s16), 63  ;;  %vm302_vm0 = vcmask 130048  }
   0xc   : > { %662 = vmatprep.subr.bf16.mxu0 %v706_v0  ;;  %696 = vmatprep.subr.bf16.mxu1 %v706_v0  ;;  %s606_s17 = sshll.u32 %s885_s16, 2  ;;  %s608_s21 = sshll.u32 %s885_s16, 3  ;;  %v806_v17 = vld [vmem:[%s882_s2] ss:$0 sm:$0xff] }
   0xd   : > { %663 = vmatpush3.bf16.msra.mxu0 %v706_v0  ;;  %697 = vmatpush3.bf16.msra.mxu1 %v706_v0  ;;  %s768_s20 = scalar_lea.vmem %s880_s0, %s606_s17  ;;  %s811_s26 = scalar_lea.vmem %s883_s3, %s608_s21 }
   0xe   : > { %v707_v1 = vld [vmem:[%s768_s20] sm:$0xff]   ;;  %v709_v3 = vld [vmem:[%s768_s20 + $0x8] sm:$0xff]   ;;  %v711_v5 = vld [vmem:[%s768_s20 + $0x10] sm:$0xff]  }
   0xf   : > { %v708_v2 = vld [vmem:[%s768_s20 + $0x40] sm:$0xff]   ;;  %664 = vmatprep.mubr.msk.bf16.mxu0 %vm302_vm0, %v707_v1  ;;  %v710_v4 = vld [vmem:[%s768_s20 + $0x48] sm:$0xff]   ;;  %v712_v6 = vld [vmem:[%s768_s20 + $0x50] sm:$0xff]  }
  0x10   : > { %680 = vmatprep.mubr.msk.bf16.mxu1 %vm302_vm0, %v708_v2  ;;  %665 = vmatmul.mubr.msk.bf16.vlgmr.msra.gmra.mxu0 %vm302_vm0, %v709_v3  ;;  %v713_v7 = vld [vmem:[%s768_s20 + $0x18] sm:$0xff]   ;;  %v715_v9 = vld [vmem:[%s768_s20 + $0x20] sm:$0xff]   ;;  %v717_v11 = vld [vmem:[%s768_s20 + $0x28] sm:$0xff]  }
  0x11   : > { %681 = vmatmul.mubr.msk.bf16.vlgmr.msra.gmra.mxu1 %vm302_vm0, %v710_v4  ;;  %668 = vmatprep.mubr.msk.bf16.mxu0 %vm302_vm0, %v711_v5  ;;  %v714_v8 = vld [vmem:[%s768_s20 + $0x58] sm:$0xff]   ;;  %v716_v10 = vld [vmem:[%s768_s20 + $0x60] sm:$0xff]   ;;  %v718_v12 = vld [vmem:[%s768_s20 + $0x68] sm:$0xff]  }
  0x12   : > { %684 = vmatprep.mubr.msk.bf16.mxu1 %vm302_vm0, %v712_v6  ;;  %v719_v13 = vld [vmem:[%s768_s20 + $0x30] sm:$0xff]   ;;  %v721_v15 = vld [vmem:[%s768_s20 + $0x38] sm:$0xff]  }
  0x13   : > { %v720_v14 = vld [vmem:[%s768_s20 + $0x70] sm:$0xff]   ;;  %v722_v16 = vld [vmem:[%s768_s20 + $0x78] sm:$0xff]  }
  0x18   : > { %669 = vmatmul.mubr.msk.bf16.gmra.mxu0 %vm302_vm0, %v713_v7 }
  0x19   : > { %685 = vmatmul.mubr.msk.bf16.gmra.mxu1 %vm302_vm0, %v714_v8  ;;  %672 = vmatprep.mubr.msk.bf16.mxu0 %vm302_vm0, %v715_v9 }
  0x1a   : > { %688 = vmatprep.mubr.msk.bf16.mxu1 %vm302_vm0, %v716_v10 }
  0x20   : > { %673 = vmatmul.mubr.msk.bf16.gmra.mxu0 %vm302_vm0, %v717_v11 }
  0x21   : > { %689 = vmatmul.mubr.msk.bf16.gmra.mxu1 %vm302_vm0, %v718_v12  ;;  %676 = vmatprep.mubr.msk.bf16.mxu0 %vm302_vm0, %v719_v13 }
  0x22   : > { %692 = vmatprep.mubr.msk.bf16.mxu1 %vm302_vm0, %v720_v14 }
  0x28   : > { %677 = vmatmul.mubr.msk.bf16.gmra.mxu0 %vm302_vm0, %v721_v15 }
  0x29   : > { %693 = vmatmul.mubr.msk.bf16.gmra.mxu1 %vm302_vm0, %v722_v16 }
  0xd0   : > { %v666_v18 = vpop.f32.mrf.mxu0 }
  0xd1   : > { %v394_v19 = vadd.f32 %v666_v18, %v806_v17  ;;  %v682_v20 = vpop.f32.mrf.mxu1 }
  0xd2   : > { %v458_v21 = vadd.f32 %v682_v20, %v806_v17  ;;  %v385_v22 = vpop.f32.mrf.mxu0 }
  0xd3   : > { %514 = vst [vmem:[%s811_s26 + $0x10] sm:$0xff] %v394_v19  ;;  %v386_v23 = vadd.f32 %v806_v17, %v385_v22  ;;  %v449_v24 = vpop.f32.mrf.mxu1 }
  0xd4   : > { %530 = vst [vmem:[%s811_s26 + $0x90] sm:$0xff] %v458_v21  ;;  %v450_v25 = vadd.f32 %v806_v17, %v449_v24  ;;  %v667_v26 = vpop.f32.mrf.mxu0 }
  0xd5   : > { %512 = vst [vmem:[%s811_s26] sm:$0xff] %v386_v23  ;;  %v397_v27 = vadd.f32 %v667_v26, %v806_v17  ;;  %v683_v28 = vpop.f32.mrf.mxu1 }
  0xd6   : > { %528 = vst [vmem:[%s811_s26 + $0x80] sm:$0xff] %v450_v25  ;;  %v461_v29 = vadd.f32 %v683_v28, %v806_v17  ;;  %v388_v30 = vpop.f32.mrf.mxu0 }
  0xd7   : > { %515 = vst [vmem:[%s811_s26 + $0x18] sm:$0xff] %v397_v27  ;;  %v389_v31 = vadd.f32 %v806_v17, %v388_v30  ;;  %v452_v32 = vpop.f32.mrf.mxu1 }
  0xd8   : > { %531 = vst [vmem:[%s811_s26 + $0x98] sm:$0xff] %v461_v29  ;;  %v453_v33 = vadd.f32 %v806_v17, %v452_v32  ;;  %v670_v34 = vpop.f32.mrf.mxu0 }
  0xd9   : > { %513 = vst [vmem:[%s811_s26 + $0x8] sm:$0xff] %v389_v31  ;;  %v410_v35 = vadd.f32 %v670_v34, %v806_v17  ;;  %v686_v36 = vpop.f32.mrf.mxu1 }
  0xda   : > { %529 = vst [vmem:[%s811_s26 + $0x88] sm:$0xff] %v453_v33  ;;  %v474_v37 = vadd.f32 %v686_v36, %v806_v17  ;;  %v401_v38 = vpop.f32.mrf.mxu0 }
  0xdb   : > { %518 = vst [vmem:[%s811_s26 + $0x30] sm:$0xff] %v410_v35  ;;  %v402_v39 = vadd.f32 %v806_v17, %v401_v38  ;;  %v465_v40 = vpop.f32.mrf.mxu1 }
  0xdc   : > { %534 = vst [vmem:[%s811_s26 + $0xb0] sm:$0xff] %v474_v37  ;;  %v466_v41 = vadd.f32 %v806_v17, %v465_v40  ;;  %v671_v42 = vpop.f32.mrf.mxu0 }
  0xdd   : > { %516 = vst [vmem:[%s811_s26 + $0x20] sm:$0xff] %v402_v39  ;;  %v413_v43 = vadd.f32 %v671_v42, %v806_v17  ;;  %v687_v44 = vpop.f32.mrf.mxu1 }
  0xde   : > { %532 = vst [vmem:[%s811_s26 + $0xa0] sm:$0xff] %v466_v41  ;;  %v477_v45 = vadd.f32 %v687_v44, %v806_v17  ;;  %v404_v46 = vpop.f32.mrf.mxu0 }
  0xdf   : > { %519 = vst [vmem:[%s811_s26 + $0x38] sm:$0xff] %v413_v43  ;;  %v405_v47 = vadd.f32 %v806_v17, %v404_v46  ;;  %v468_v48 = vpop.f32.mrf.mxu1 }
  0xe0   : > { %535 = vst [vmem:[%s811_s26 + $0xb8] sm:$0xff] %v477_v45  ;;  %v469_v49 = vadd.f32 %v806_v17, %v468_v48  ;;  %v674_v50 = vpop.f32.mrf.mxu0 }
  0xe1   : > { %517 = vst [vmem:[%s811_s26 + $0x28] sm:$0xff] %v405_v47  ;;  %v426_v51 = vadd.f32 %v674_v50, %v806_v17  ;;  %v690_v52 = vpop.f32.mrf.mxu1 }
  0xe2   : > { %533 = vst [vmem:[%s811_s26 + $0xa8] sm:$0xff] %v469_v49  ;;  %v490_v53 = vadd.f32 %v690_v52, %v806_v17  ;;  %v417_v54 = vpop.f32.mrf.mxu0 }
  0xe3   : > { %522 = vst [vmem:[%s811_s26 + $0x50] sm:$0xff] %v426_v51  ;;  %v418_v55 = vadd.f32 %v806_v17, %v417_v54  ;;  %v481_v56 = vpop.f32.mrf.mxu1 }
  0xe4   : > { %538 = vst [vmem:[%s811_s26 + $0xd0] sm:$0xff] %v490_v53  ;;  %v482_v57 = vadd.f32 %v806_v17, %v481_v56  ;;  %v675_v58 = vpop.f32.mrf.mxu0 }
  0xe5   : > { %520 = vst [vmem:[%s811_s26 + $0x40] sm:$0xff] %v418_v55  ;;  %v429_v59 = vadd.f32 %v675_v58, %v806_v17  ;;  %v691_v60 = vpop.f32.mrf.mxu1 }
  0xe6   : > { %536 = vst [vmem:[%s811_s26 + $0xc0] sm:$0xff] %v482_v57  ;;  %v493_v61 = vadd.f32 %v691_v60, %v806_v17  ;;  %v420_v62 = vpop.f32.mrf.mxu0 }
  0xe7   : > { %523 = vst [vmem:[%s811_s26 + $0x58] sm:$0xff] %v429_v59  ;;  %v421_v63 = vadd.f32 %v806_v17, %v420_v62  ;;  %v484_v0 = vpop.f32.mrf.mxu1 }
  0xe8   : > { %539 = vst [vmem:[%s811_s26 + $0xd8] sm:$0xff] %v493_v61  ;;  %v485_v1 = vadd.f32 %v806_v17, %v484_v0  ;;  %v678_v2 = vpop.f32.mrf.mxu0 }
  0xe9   : > { %521 = vst [vmem:[%s811_s26 + $0x48] sm:$0xff] %v421_v63  ;;  %v442_v3 = vadd.f32 %v678_v2, %v806_v17  ;;  %v694_v4 = vpop.f32.mrf.mxu1 }
  0xea   : > { %537 = vst [vmem:[%s811_s26 + $0xc8] sm:$0xff] %v485_v1  ;;  %v506_v5 = vadd.f32 %v694_v4, %v806_v17  ;;  %v433_v6 = vpop.f32.mrf.mxu0 }
  0xeb   : > { %526 = vst [vmem:[%s811_s26 + $0x70] sm:$0xff] %v442_v3  ;;  %v434_v7 = vadd.f32 %v806_v17, %v433_v6  ;;  %v497_v8 = vpop.f32.mrf.mxu1 }
  0xec   : > { %542 = vst [vmem:[%s811_s26 + $0xf0] sm:$0xff] %v506_v5  ;;  %v498_v9 = vadd.f32 %v806_v17, %v497_v8  ;;  %v679_v10 = vpop.f32.mrf.mxu0 }
  0xed   : > { %524 = vst [vmem:[%s811_s26 + $0x60] sm:$0xff] %v434_v7  ;;  %v445_v11 = vadd.f32 %v679_v10, %v806_v17  ;;  %v695_v12 = vpop.f32.mrf.mxu1 }
  0xee   : > { %540 = vst [vmem:[%s811_s26 + $0xe0] sm:$0xff] %v498_v9  ;;  %v509_v13 = vadd.f32 %v695_v12, %v806_v17  ;;  %v436_v14 = vpop.f32.mrf.mxu0 }
  0xef   : > { %527 = vst [vmem:[%s811_s26 + $0x78] sm:$0xff] %v445_v11  ;;  %v437_v15 = vadd.f32 %v806_v17, %v436_v14  ;;  %v500_v16 = vpop.f32.mrf.mxu1 }
  0xf0   : > { %543 = vst [vmem:[%s811_s26 + $0xf8] sm:$0xff] %v509_v13  ;;  %v501_v18 = vadd.f32 %v806_v17, %v500_v16 }
  0xf1   : > { %525 = vst [vmem:[%s811_s26 + $0x68] sm:$0xff] %v437_v15 }
  0xf2   : > { %541 = vst [vmem:[%s811_s26 + $0xe8] sm:$0xff] %v501_v18 }
  0xf3 PF: > { %s13_s12 = sadd.s32 1, %s729_s12  }
  0xf4   : > { %p10_p4 = scmp.ge.s32.totalorder %s13_s12, 4  }
  0xf6   :  { %12 = sbr.rel (!%p10_p4) target bundleno = 1 (0x1), region = 62 }

// kernel: a_call__.7
= control target key start
LH: loop header
LB: loop body
LE: loop exit
PB: predicated region body
PF: predicated region fallthrough
CT: control target
= control target key end

     0   :  { %s766_s12 = smov 0   ;;  %s898_s0 = inlined_call_operand.vmem [shape: bf16[512,32], index: 0, kind: input, shape index: {}]   ;;  %s899_s1 = inlined_call_operand.vmem [shape: bf16[32,128], index: 1, kind: input, shape index: {}]   ;;  %s900_s2 = inlined_call_operand.vmem [shape: f32[1,128], index: 2, kind: input, shape index: {}]   ;;  %s901_s3 = inlined_call_operand.vmem [shape: f32[512,128], index: 3, kind: output, shape index: {}]  }
   0x1 LB: > { %s608_s13 = sadd.s32 4294967295, %s744_s12   ;;  %p612_p0 = scmp.ge.s32.totalorder %s744_s12, 1  ;;  %s744_s12 = sphi %s766_s12, %s13_s12  }
   0x2   : > { %p138_p1 = scmp.lt.s32.totalorder %s744_s12, 3 }
   0x4   : > { %p139_p2 = pnand %p612_p0, %p138_p1 }
   0x5   : > { %s613_s16 = sshll.u32 (!%p139_p2), %s608_s13, 5 }
   0x6   : > { %142 = sbr.rel (%p139_p2) target bundleno = 246 (0xf6), region = 32  ;;  %p163_p3 = scmp.lt.s32.totalorder (!%p139_p2), %s613_s16, 63 }
   0xb   : > { %v720_v0 = vld [vmem:[%s899_s1 + $0x8] sm:$0xff]   ;;  %v721_v1 = vld [vmem:[%s899_s1] sm:$0xff]   ;;  %s903_s16 = smov (!%p163_p3, %s613_s16), 63  ;;  %vm310_vm0 = vcmask 261120  }
   0xc   : > { %672 = vmatprep.subr.bf16.mxu0 %v720_v0  ;;  %708 = vmatprep.subr.bf16.mxu1 %v720_v0  ;;  %s614_s19 = sshll.u32 %s903_s16, 2  ;;  %s616_s23 = sshll.u32 %s903_s16, 3  ;;  %v824_v18 = vld [vmem:[%s900_s2] ss:$0 sm:$0xff] }
   0xd   : > { %673 = vmatpush3.bf16.msra.mxu0 %v720_v0  ;;  %710 = vmatpush3.bf16.msra.mxu1 %v720_v0  ;;  %s786_s22 = scalar_lea.vmem %s898_s0, %s614_s19  ;;  %s829_s28 = scalar_lea.vmem %s901_s3, %s616_s23 }
   0xe   : > { %674 = vmatprep.subr.bf16.mxu0 %v721_v1  ;;  %709 = vmatprep.subr.bf16.mxu1 %v721_v1  ;;  %v722_v2 = vld [vmem:[%s786_s22] sm:$0xff]   ;;  %v724_v4 = vld [vmem:[%s786_s22 + $0x8] sm:$0xff]   ;;  %v726_v6 = vld [vmem:[%s786_s22 + $0x10] sm:$0xff]  }
   0xf   : > { %v723_v3 = vld [vmem:[%s786_s22 + $0x40] sm:$0xff]   ;;  %676 = vmatprep.mubr.msk.bf16.mxu0 %vm310_vm0, %v722_v2  ;;  %v725_v5 = vld [vmem:[%s786_s22 + $0x48] sm:$0xff]   ;;  %v727_v7 = vld [vmem:[%s786_s22 + $0x50] sm:$0xff]  }
  0x10   : > { %692 = vmatprep.mubr.msk.bf16.mxu1 %vm310_vm0, %v723_v3  ;;  %v728_v8 = vld [vmem:[%s786_s22 + $0x18] sm:$0xff]   ;;  %v730_v10 = vld [vmem:[%s786_s22 + $0x20] sm:$0xff]   ;;  %v732_v12 = vld [vmem:[%s786_s22 + $0x28] sm:$0xff]  }
  0x11   : > { %675 = vmatpush3.bf16.msra.mxu0 %v721_v1  ;;  %711 = vmatpush3.bf16.msra.mxu1 %v721_v1  ;;  %v729_v9 = vld [vmem:[%s786_s22 + $0x58] sm:$0xff]   ;;  %v731_v11 = vld [vmem:[%s786_s22 + $0x60] sm:$0xff]   ;;  %v733_v13 = vld [vmem:[%s786_s22 + $0x68] sm:$0xff]  }
  0x12   : > { %v734_v14 = vld [vmem:[%s786_s22 + $0x30] sm:$0xff]   ;;  %v736_v16 = vld [vmem:[%s786_s22 + $0x38] sm:$0xff]  }
  0x13   : > { %v735_v15 = vld [vmem:[%s786_s22 + $0x70] sm:$0xff]   ;;  %v737_v17 = vld [vmem:[%s786_s22 + $0x78] sm:$0xff]  }
  0x14   : > { %677 = vmatmul.mubr.msk.bf16.vlgmr.msra.gmra.mxu0 %vm310_vm0, %v724_v4  ;;  %693 = vmatmul.mubr.msk.bf16.vlgmr.msra.gmra.mxu1 %vm310_vm0, %v725_v5 }
  0x15   : > { %680 = vmatprep.mubr.msk.bf16.mxu0 %vm310_vm0, %v726_v6  ;;  %696 = vmatprep.mubr.msk.bf16.mxu1 %vm310_vm0, %v727_v7 }
  0x1c   : > { %681 = vmatmul.mubr.msk.bf16.gmra.mxu0 %vm310_vm0, %v728_v8  ;;  %697 = vmatmul.mubr.msk.bf16.gmra.mxu1 %vm310_vm0, %v729_v9 }
  0x1d   : > { %684 = vmatprep.mubr.msk.bf16.mxu0 %vm310_vm0, %v730_v10  ;;  %700 = vmatprep.mubr.msk.bf16.mxu1 %vm310_vm0, %v731_v11 }
  0x24   : > { %685 = vmatmul.mubr.msk.bf16.gmra.mxu0 %vm310_vm0, %v732_v12  ;;  %701 = vmatmul.mubr.msk.bf16.gmra.mxu1 %vm310_vm0, %v733_v13 }
  0x25   : > { %688 = vmatprep.mubr.msk.bf16.mxu0 %vm310_vm0, %v734_v14  ;;  %704 = vmatprep.mubr.msk.bf16.mxu1 %vm310_vm0, %v735_v15 }
  0x2c   : > { %689 = vmatmul.mubr.msk.bf16.gmra.mxu0 %vm310_vm0, %v736_v16  ;;  %705 = vmatmul.mubr.msk.bf16.gmra.mxu1 %vm310_vm0, %v737_v17 }
  0xd4   : > { %v678_v19 = vpop.f32.mrf.mxu0  ;;  %v694_v21 = vpop.f32.mrf.mxu1 }
  0xd5   : > { %v402_v20 = vadd.f32 %v678_v19, %v824_v18  ;;  %v466_v22 = vadd.f32 %v694_v21, %v824_v18 }
  0xd6   : > { %v393_v23 = vpop.f32.mrf.mxu0  ;;  %v457_v25 = vpop.f32.mrf.mxu1 }
  0xd7   : > { %522 = vst [vmem:[%s829_s28 + $0x10] sm:$0xff] %v402_v20  ;;  %v394_v24 = vadd.f32 %v824_v18, %v393_v23  ;;  %538 = vst [vmem:[%s829_s28 + $0x90] sm:$0xff] %v466_v22  ;;  %v458_v26 = vadd.f32 %v824_v18, %v457_v25 }
  0xd8   : > { %v679_v27 = vpop.f32.mrf.mxu0  ;;  %v695_v29 = vpop.f32.mrf.mxu1 }
  0xd9   : > { %520 = vst [vmem:[%s829_s28] sm:$0xff] %v394_v24  ;;  %v405_v28 = vadd.f32 %v679_v27, %v824_v18  ;;  %536 = vst [vmem:[%s829_s28 + $0x80] sm:$0xff] %v458_v26  ;;  %v469_v30 = vadd.f32 %v695_v29, %v824_v18 }
  0xda   : > { %v396_v31 = vpop.f32.mrf.mxu0  ;;  %v460_v33 = vpop.f32.mrf.mxu1 }
  0xdb   : > { %523 = vst [vmem:[%s829_s28 + $0x18] sm:$0xff] %v405_v28  ;;  %v397_v32 = vadd.f32 %v824_v18, %v396_v31  ;;  %539 = vst [vmem:[%s829_s28 + $0x98] sm:$0xff] %v469_v30  ;;  %v461_v34 = vadd.f32 %v824_v18, %v460_v33 }
  0xdc   : > { %v682_v35 = vpop.f32.mrf.mxu0  ;;  %v698_v37 = vpop.f32.mrf.mxu1 }
  0xdd   : > { %521 = vst [vmem:[%s829_s28 + $0x8] sm:$0xff] %v397_v32  ;;  %v418_v36 = vadd.f32 %v682_v35, %v824_v18  ;;  %537 = vst [vmem:[%s829_s28 + $0x88] sm:$0xff] %v461_v34  ;;  %v482_v38 = vadd.f32 %v698_v37, %v824_v18 }
  0xde   : > { %v409_v39 = vpop.f32.mrf.mxu0  ;;  %v473_v41 = vpop.f32.mrf.mxu1 }
  0xdf   : > { %526 = vst [vmem:[%s829_s28 + $0x30] sm:$0xff] %v418_v36  ;;  %v410_v40 = vadd.f32 %v824_v18, %v409_v39  ;;  %542 = vst [vmem:[%s829_s28 + $0xb0] sm:$0xff] %v482_v38  ;;  %v474_v42 = vadd.f32 %v824_v18, %v473_v41 }
  0xe0   : > { %v683_v43 = vpop.f32.mrf.mxu0  ;;  %v699_v45 = vpop.f32.mrf.mxu1 }
  0xe1   : > { %524 = vst [vmem:[%s829_s28 + $0x20] sm:$0xff] %v410_v40  ;;  %v421_v44 = vadd.f32 %v683_v43, %v824_v18  ;;  %540 = vst [vmem:[%s829_s28 + $0xa0] sm:$0xff] %v474_v42  ;;  %v485_v46 = vadd.f32 %v699_v45, %v824_v18 }
  0xe2   : > { %v412_v47 = vpop.f32.mrf.mxu0  ;;  %v476_v49 = vpop.f32.mrf.mxu1 }
  0xe3   : > { %527 = vst [vmem:[%s829_s28 + $0x38] sm:$0xff] %v421_v44  ;;  %v413_v48 = vadd.f32 %v824_v18, %v412_v47  ;;  %543 = vst [vmem:[%s829_s28 + $0xb8] sm:$0xff] %v485_v46  ;;  %v477_v50 = vadd.f32 %v824_v18, %v476_v49 }
  0xe4   : > { %v686_v51 = vpop.f32.mrf.mxu0  ;;  %v702_v53 = vpop.f32.mrf.mxu1 }
  0xe5   : > { %525 = vst [vmem:[%s829_s28 + $0x28] sm:$0xff] %v413_v48  ;;  %v434_v52 = vadd.f32 %v686_v51, %v824_v18  ;;  %541 = vst [vmem:[%s829_s28 + $0xa8] sm:$0xff] %v477_v50  ;;  %v498_v54 = vadd.f32 %v702_v53, %v824_v18 }
  0xe6   : > { %v425_v55 = vpop.f32.mrf.mxu0  ;;  %v489_v57 = vpop.f32.mrf.mxu1 }
  0xe7   : > { %530 = vst [vmem:[%s829_s28 + $0x50] sm:$0xff] %v434_v52  ;;  %v426_v56 = vadd.f32 %v824_v18, %v425_v55  ;;  %546 = vst [vmem:[%s829_s28 + $0xd0] sm:$0xff] %v498_v54  ;;  %v490_v58 = vadd.f32 %v824_v18, %v489_v57 }
  0xe8   : > { %v687_v59 = vpop.f32.mrf.mxu0  ;;  %v703_v61 = vpop.f32.mrf.mxu1 }
  0xe9   : > { %528 = vst [vmem:[%s829_s28 + $0x40] sm:$0xff] %v426_v56  ;;  %v437_v60 = vadd.f32 %v687_v59, %v824_v18  ;;  %544 = vst [vmem:[%s829_s28 + $0xc0] sm:$0xff] %v490_v58  ;;  %v501_v62 = vadd.f32 %v703_v61, %v824_v18 }
  0xea   : > { %v428_v63 = vpop.f32.mrf.mxu0  ;;  %v492_v1 = vpop.f32.mrf.mxu1 }
  0xeb   : > { %531 = vst [vmem:[%s829_s28 + $0x58] sm:$0xff] %v437_v60  ;;  %v429_v0 = vadd.f32 %v824_v18, %v428_v63  ;;  %547 = vst [vmem:[%s829_s28 + $0xd8] sm:$0xff] %v501_v62  ;;  %v493_v2 = vadd.f32 %v824_v18, %v492_v1 }
  0xec   : > { %v690_v3 = vpop.f32.mrf.mxu0  ;;  %v706_v5 = vpop.f32.mrf.mxu1 }
  0xed   : > { %529 = vst [vmem:[%s829_s28 + $0x48] sm:$0xff] %v429_v0  ;;  %v450_v4 = vadd.f32 %v690_v3, %v824_v18  ;;  %545 = vst [vmem:[%s829_s28 + $0xc8] sm:$0xff] %v493_v2  ;;  %v514_v6 = vadd.f32 %v706_v5, %v824_v18 }
  0xee   : > { %v441_v7 = vpop.f32.mrf.mxu0  ;;  %v505_v9 = vpop.f32.mrf.mxu1 }
  0xef   : > { %534 = vst [vmem:[%s829_s28 + $0x70] sm:$0xff] %v450_v4  ;;  %v442_v8 = vadd.f32 %v824_v18, %v441_v7  ;;  %550 = vst [vmem:[%s829_s28 + $0xf0] sm:$0xff] %v514_v6  ;;  %v506_v10 = vadd.f32 %v824_v18, %v505_v9 }
  0xf0   : > { %v691_v11 = vpop.f32.mrf.mxu0  ;;  %v707_v13 = vpop.f32.mrf.mxu1 }
  0xf1   : > { %532 = vst [vmem:[%s829_s28 + $0x60] sm:$0xff] %v442_v8  ;;  %v453_v12 = vadd.f32 %v691_v11, %v824_v18  ;;  %548 = vst [vmem:[%s829_s28 + $0xe0] sm:$0xff] %v506_v10  ;;  %v517_v14 = vadd.f32 %v707_v13, %v824_v18 }
  0xf2   : > { %v444_v15 = vpop.f32.mrf.mxu0  ;;  %v508_v17 = vpop.f32.mrf.mxu1 }
  0xf3   : > { %535 = vst [vmem:[%s829_s28 + $0x78] sm:$0xff] %v453_v12  ;;  %v445_v16 = vadd.f32 %v824_v18, %v444_v15  ;;  %551 = vst [vmem:[%s829_s28 + $0xf8] sm:$0xff] %v517_v14  ;;  %v509_v19 = vadd.f32 %v824_v18, %v508_v17 }
  0xf5   : > { %533 = vst [vmem:[%s829_s28 + $0x68] sm:$0xff] %v445_v16  ;;  %549 = vst [vmem:[%s829_s28 + $0xe8] sm:$0xff] %v509_v19 }
  0xf6 PF: > { %s13_s12 = sadd.s32 1, %s744_s12  }
  0xf7   : > { %p10_p4 = scmp.ge.s32.totalorder %s13_s12, 4  }
  0xf9   :  { %12 = sbr.rel (!%p10_p4) target bundleno = 1 (0x1), region = 62 }

</bundles_post_ra>
